<compile_context>
chip_gen: v7x
topology: tpu7x:2x2x1
jax: 0.10.0
libtpu: 0.0.40
codegen_flags: <defaults>
</compile_context>

<pallas_src>
import functools

import jax
import jax.numpy as jnp
from jax.experimental import pallas as pl
from jax.experimental.pallas import tpu as pltpu

BN_EPS = 1e-5
LANES = 128
VMEM_LIMIT = 32 * 1024 * 1024  # safe on v5e/v6e/v7x; raise to 64-96 MiB on v6e
                               # when using larger M tiles at real UNet3+ sizes.


def _round_up(x, m):
    return (x + m - 1) // m * m


# ---------------------------------------------------------------------------
# Pass 1: conv as one (tm, 9*Cin) x (9*Cin, Cout_pad) MXU matmul per tile,
#         plus per-channel sum / sum-of-squares for train-mode BatchNorm.
# ---------------------------------------------------------------------------
def _conv_stats_kernel(taps_ref, w_ref, y_ref, stats_ref):
    i = pl.program_id(0)

    @pl.when(i == 0)
    def _():
        stats_ref[...] = jnp.zeros_like(stats_ref)

    y = jnp.dot(taps_ref[...], w_ref[...], preferred_element_type=jnp.float32)
    y_ref[...] = y

    # Single pass over the tile: sum and sum-of-squares (f32).
    stats_ref[0:1, :] += jnp.sum(y, axis=0, keepdims=True)
    stats_ref[1:2, :] += jnp.sum(y * y, axis=0, keepdims=True)


# ---------------------------------------------------------------------------
# Pass 2: fused BN epilogue (one scale + shift) + ReLU.
# ---------------------------------------------------------------------------
def _bn_relu_kernel(y_ref, scale_ref, shift_ref, o_ref):
    o_ref[...] = jnp.maximum(
        y_ref[...] * scale_ref[...] + shift_ref[...], 0.0
    ).astype(o_ref.dtype)


# ---------------------------------------------------------------------------
# batch_norm=False path: conv + bias + ReLU in a single tiled pass.
# ---------------------------------------------------------------------------
def _conv_bias_relu_kernel(taps_ref, w_ref, b_ref, o_ref):
    y = jnp.dot(taps_ref[...], w_ref[...], preferred_element_type=jnp.float32)
    o_ref[...] = jnp.maximum(y + b_ref[...], 0.0).astype(o_ref.dtype)


def _im2col(x_nhwc, pad):
    """Fold the 9 shifted 3x3 taps into one (N*Ho*Wo, 9*Cin) operand."""
    n, h, w, cin = x_nhwc.shape
    xp = jnp.pad(x_nhwc, ((0, 0), (pad, pad), (pad, pad), (0, 0)))
    ho, wo = h + 2 * pad - 2, w + 2 * pad - 2
    cols = []
    for ky in range(3):
        for kx in range(3):
            cols.append(xp[:, ky:ky + ho, kx:kx + wo, :])
    taps = jnp.concatenate(cols, axis=-1).reshape(n * ho * wo, 9 * cin)
    return taps, ho, wo


@functools.partial(jax.jit,
                   static_argnames=("padding", "batch_norm", "block_m"))
def unet3p_conv_block(x_nchw, weight_oihw, bias, gamma, beta, *,
                      padding=True, batch_norm=True, block_m=1024):
    """Forward pass of Unet3pConvBlock.  x_nchw: (N, Cin, H, W)."""
    n, cin, h, w = x_nchw.shape
    cout = weight_oihw.shape[0]
    pad = 1 if padding else 0
    out_dtype = x_nchw.dtype

    k = 9 * cin
    cout_p = _round_up(cout, LANES)           # lane-dense output columns

    # ---- glue: NCHW -> NHWC (bf16), folded im2col ---------------------------
    x_nhwc = jnp.transpose(x_nchw, (0, 2, 3, 1)).astype(jnp.bfloat16)
    taps, ho, wo = _im2col(x_nhwc, pad)       # (M, 9*Cin) bf16
    m = n * ho * wo

    tm = min(block_m, _round_up(m, 16))
    tm = _round_up(tm, 16)
    m_pad = _round_up(m, tm)
    if m_pad != m:
        taps = jnp.pad(taps, ((0, m_pad - m), (0, 0)))
    grid_m = m_pad // tm

    # OIHW -> (3,3,Cin,Cout) -> (9*Cin, Cout_pad), zero-padded cols, bf16.
    w2 = jnp.transpose(weight_oihw, (2, 3, 1, 0)).reshape(k, cout)
    w2 = jnp.pad(w2, ((0, 0), (0, cout_p - cout))).astype(jnp.bfloat16)

    if batch_norm:
        cost = pl.CostEstimate(
            flops=2 * m_pad * k * cout_p,
            transcendentals=0,
            bytes_accessed=(taps.size * 2 + w2.size * 2
                            + m_pad * cout_p * 4 + 2 * cout_p * 4))

        y_flat, stats = pl.pallas_call(
            _conv_stats_kernel,
            grid=(grid_m,),
            in_specs=[
                pl.BlockSpec((tm, k), lambda i: (i, 0)),
                pl.BlockSpec((k, cout_p), lambda i: (0, 0)),
            ],
            out_specs=[
                pl.BlockSpec((tm, cout_p), lambda i: (i, 0)),
                pl.BlockSpec((2, cout_p), lambda i: (0, 0)),   # resident accum
            ],
            out_shape=[
                jax.ShapeDtypeStruct((m_pad, cout_p), jnp.float32),
                jax.ShapeDtypeStruct((2, cout_p), jnp.float32),
            ],
            compiler_params=pltpu.CompilerParams(
                dimension_semantics=("arbitrary",),
                vmem_limit_bytes=VMEM_LIMIT),
            cost_estimate=cost,
        )(taps, w2)

        # Train-mode BatchNorm2d batch statistics over N*H*W.  Padded M rows
        # contribute exact zeros (no conv bias) so we divide by the true M.
        mean = stats[0] / m
        var = jnp.maximum(stats[1] / m - mean * mean, 0.0)
        gamma_p = jnp.pad(gamma.astype(jnp.float32), (0, cout_p - cout))
        beta_p = jnp.pad(beta.astype(jnp.float32), (0, cout_p - cout))
        scale = gamma_p * jax.lax.rsqrt(var + BN_EPS)
        shift = beta_p - mean * scale
        # NOTE: conv bias is mathematically canceled by the mean subtraction
        # of train-mode BN, so it is skipped entirely on this path.

        out_flat = pl.pallas_call(
            _bn_relu_kernel,
            grid=(grid_m,),
            in_specs=[
                pl.BlockSpec((tm, cout_p), lambda i: (i, 0)),
                pl.BlockSpec((1, cout_p), lambda i: (0, 0)),
                pl.BlockSpec((1, cout_p), lambda i: (0, 0)),
            ],
            out_specs=pl.BlockSpec((tm, cout_p), lambda i: (i, 0)),
            out_shape=jax.ShapeDtypeStruct((m_pad, cout_p), out_dtype),
            compiler_params=pltpu.CompilerParams(
                dimension_semantics=("parallel",),
                vmem_limit_bytes=VMEM_LIMIT),
        )(y_flat, scale.reshape(1, cout_p), shift.reshape(1, cout_p))
    else:
        b_p = jnp.pad(bias.astype(jnp.float32),
                      (0, cout_p - cout)).reshape(1, cout_p)
        out_flat = pl.pallas_call(
            _conv_bias_relu_kernel,
            grid=(grid_m,),
            in_specs=[
                pl.BlockSpec((tm, k), lambda i: (i, 0)),
                pl.BlockSpec((k, cout_p), lambda i: (0, 0)),
                pl.BlockSpec((1, cout_p), lambda i: (0, 0)),
            ],
            out_specs=pl.BlockSpec((tm, cout_p), lambda i: (i, 0)),
            out_shape=jax.ShapeDtypeStruct((m_pad, cout_p), out_dtype),
            compiler_params=pltpu.CompilerParams(
                dimension_semantics=("parallel",),
                vmem_limit_bytes=VMEM_LIMIT),
        )(taps, w2, b_p)

    out = out_flat[:m, :cout].reshape(n, ho, wo, cout)
    return jnp.transpose(out, (0, 3, 1, 2))                  # back to NCHW


# ---------------------------------------------------------------------------
# Pure-JAX f32 reference matching PyTorch semantics (train-mode BN).
# ---------------------------------------------------------------------------
def _reference(x, weight, bias, gamma, beta, *, batch_norm=True):
    cout = weight.shape[0]
    y = jax.lax.conv_general_dilated(
        x, weight, window_strides=(1, 1), padding=((1, 1), (1, 1)),
        dimension_numbers=("NCHW", "OIHW", "NCHW"))
    y = y + bias.reshape(1, cout, 1, 1)
    if batch_norm:
        mean = jnp.mean(y, axis=(0, 2, 3), keepdims=True)
        var = jnp.mean((y - mean) ** 2, axis=(0, 2, 3), keepdims=True)
        y = (y - mean) * jax.lax.rsqrt(var + BN_EPS)
        y = y * gamma.reshape(1, cout, 1, 1) + beta.reshape(1, cout, 1, 1)
    return jnp.maximum(y, 0.0)


if __name__ == "__main__":
    # Module config: in_channels=4, out_channels=8, padding=True, batch_norm=True
    N, CIN, COUT, H, W = 2, 4, 8, 16, 16

    key = jax.random.PRNGKey(0)
    kx, kw, kb = jax.random.split(key, 3)

    x = jax.random.normal(kx, (N, CIN, H, W), dtype=jnp.float32)

    fan_in = CIN * 3 * 3
    weight = jax.random.normal(kw, (COUT, CIN, 3, 3), jnp.float32) / jnp.sqrt(fan_in)
    bias = 0.01 * jax.random.normal(kb, (COUT,), jnp.float32)
    gamma = jnp.ones((COUT,), jnp.float32)
    beta = jnp.zeros((COUT,), jnp.float32)

    # block_m=128 -> 4 M-tiles: exercises the pipelined grid + stats accumulation.
    out = unet3p_conv_block(x, weight, bias, gamma, beta,
                            padding=True, batch_norm=True, block_m=128)
    out = jax.block_until_ready(out)
    assert out.shape == (N, COUT, H, W), out.shape

    ref = jax.block_until_ready(
        _reference(x, weight, bias, gamma, beta, batch_norm=True))
    # Matmul operands are bf16 (f32 accumulate), so tolerance vs the f32
    # reference is loosened accordingly.
    err = float(jnp.max(jnp.abs(out - ref)))
    assert jnp.allclose(out, ref, atol=5e-2, rtol=5e-2), err

    # Also exercise the batch_norm=False path (conv + bias + ReLU).
    out_nb = jax.block_until_ready(
        unet3p_conv_block(x, weight, bias, gamma, beta,
                          padding=True, batch_norm=False, block_m=128))
    ref_nb = jax.block_until_ready(
        _reference(x, weight, bias, gamma, beta, batch_norm=False))
    err_nb = float(jnp.max(jnp.abs(out_nb - ref_nb)))
    assert jnp.allclose(out_nb, ref_nb, atol=5e-2, rtol=5e-2), err_nb

    print("KERNEL_OK")
</pallas_src>

<mosaic_0001>
module attributes {stable_mosaic.version = 11 : i64} {
  func.func @_conv_stats_kernel(%arg0: i32, %arg1: memref<128x36xbf16, #tpu.memory_space<vmem>>, %arg2: memref<36x128xbf16, #tpu.memory_space<vmem>>, %arg3: memref<128x128xf32, #tpu.memory_space<vmem>>, %arg4: memref<2x128xf32, #tpu.memory_space<vmem>>) attributes {dimension_semantics = [#tpu.dimension_semantics<arbitrary>], iteration_bounds = array<i64: 4>, scalar_prefetch = 0 : i64, scratch_operands = 0 : i64, tpu.core_type = #tpu.core_type<tc>, window_params = [{transform_indices = @transform_0, window_bounds = array<i64: 128, 36>}, {pipeline_mode = #tpu.pipeline_mode<synchronous>, transform_indices = @transform_1, window_bounds = array<i64: 36, 128>}, {transform_indices = @transform_2, window_bounds = array<i64: 128, 128>}, {pipeline_mode = #tpu.pipeline_mode<synchronous>, transform_indices = @transform_3, window_bounds = array<i64: 2, 128>}]} {
    %c0_i32 = arith.constant 0 : i32
    %0 = arith.cmpi eq, %arg0, %c0_i32 : i32
    %1 = arith.extui %0 : i1 to i32
    %c0_i32_0 = arith.constant 0 : i32
    %2 = arith.cmpi ne, %1, %c0_i32_0 : i32
    scf.if %2 {
      %cst_15 = arith.constant 0.000000e+00 : f32
      %18 = vector.broadcast %cst_15 : f32 to vector<2x128xf32>
      %c0_16 = arith.constant 0 : index
      %c0_17 = arith.constant 0 : index
      %19 = vector.load %arg4[%c0_16, %c0_17] : memref<2x128xf32, #tpu.memory_space<vmem>>, vector<2x128xf32>
      tpu.vector_store %arg4[%c0_16, %c0_17], %18 {strides = array<i32>} : memref<2x128xf32, #tpu.memory_space<vmem>>, vector<2x128xf32>,
    } else {
    }
    %c0 = arith.constant 0 : index
    %c0_1 = arith.constant 0 : index
    %3 = vector.load %arg1[%c0, %c0_1] : memref<128x36xbf16, #tpu.memory_space<vmem>>, vector<128x36xbf16>
    %c0_2 = arith.constant 0 : index
    %c0_3 = arith.constant 0 : index
    %4 = vector.load %arg2[%c0_2, %c0_3] : memref<36x128xbf16, #tpu.memory_space<vmem>>, vector<36x128xbf16>
    %cst = arith.constant dense<0.000000e+00> : vector<128x128xf32>
    %5 = tpu.matmul %3, %4, %cst {dimension_numbers = #tpu.dot_dimension_numbers<[1], [0], [0], [1], [0, 0, 1, 1], [], []>} : vector<128x36xbf16>, vector<36x128xbf16>, vector<128x128xf32> -> vector<128x128xf32>
    %c0_4 = arith.constant 0 : index
    %c0_5 = arith.constant 0 : index
    %6 = vector.load %arg3[%c0_4, %c0_5] : memref<128x128xf32, #tpu.memory_space<vmem>>, vector<128x128xf32>
    tpu.vector_store %arg3[%c0_4, %c0_5], %5 {strides = array<i32>} : memref<128x128xf32, #tpu.memory_space<vmem>>, vector<128x128xf32>,
    %c0_6 = arith.constant 0 : index
    %c0_7 = arith.constant 0 : index
    %7 = vector.load %arg4[%c0_6, %c0_7] : memref<2x128xf32, #tpu.memory_space<vmem>>, vector<1x128xf32>
    %cst_8 = arith.constant dense<0.000000e+00> : vector<128xf32>
    %8 = vector.multi_reduction <add>, %5, %cst_8 [0] : vector<128x128xf32> to vector<128xf32>
    %9 = vector.shape_cast %8 : vector<128xf32> to vector<1x128xf32>
    %10 = arith.addf %7, %9 : vector<1x128xf32>
    %c0_9 = arith.constant 0 : index
    %c0_10 = arith.constant 0 : index
    %11 = vector.load %arg4[%c0_9, %c0_10] : memref<2x128xf32, #tpu.memory_space<vmem>>, vector<1x128xf32>
    tpu.vector_store %arg4[%c0_9, %c0_10], %10 {strides = array<i32>} : memref<2x128xf32, #tpu.memory_space<vmem>>, vector<1x128xf32>,
    %c1 = arith.constant 1 : index
    %c0_11 = arith.constant 0 : index
    %12 = vector.load %arg4[%c1, %c0_11] : memref<2x128xf32, #tpu.memory_space<vmem>>, vector<1x128xf32>
    %13 = arith.mulf %5, %5 : vector<128x128xf32>
    %cst_12 = arith.constant dense<0.000000e+00> : vector<128xf32>
    %14 = vector.multi_reduction <add>, %13, %cst_12 [0] : vector<128x128xf32> to vector<128xf32>
    %15 = vector.shape_cast %14 : vector<128xf32> to vector<1x128xf32>
    %16 = arith.addf %12, %15 : vector<1x128xf32>
    %c1_13 = arith.constant 1 : index
    %c0_14 = arith.constant 0 : index
    %17 = vector.load %arg4[%c1_13, %c0_14] : memref<2x128xf32, #tpu.memory_space<vmem>>, vector<1x128xf32>
    tpu.vector_store %arg4[%c1_13, %c0_14], %16 {strides = array<i32>} : memref<2x128xf32, #tpu.memory_space<vmem>>, vector<1x128xf32>,
    return
  }
  func.func @transform_0(%arg0: i32) -> (i32, i32) {
    %c0_i32 = arith.constant 0 : i32
    %c0_i32_0 = arith.constant 0 : i32
    return %arg0, %c0_i32 : i32, i32
  }
  func.func @transform_1(%arg0: i32) -> (i32, i32) {
    %c0_i32 = arith.constant 0 : i32
    %c0_i32_0 = arith.constant 0 : i32
    %c0_i32_1 = arith.constant 0 : i32
    return %c0_i32, %c0_i32_0 : i32, i32
  }
  func.func @transform_2(%arg0: i32) -> (i32, i32) {
    %c0_i32 = arith.constant 0 : i32
    %c0_i32_0 = arith.constant 0 : i32
    return %arg0, %c0_i32 : i32, i32
  }
  func.func @transform_3(%arg0: i32) -> (i32, i32) {
    %c0_i32 = arith.constant 0 : i32
    %c0_i32_0 = arith.constant 0 : i32
    %c0_i32_1 = arith.constant 0 : i32
    return %c0_i32, %c0_i32_0 : i32, i32
  }
}

module attributes {stable_mosaic.version = 11 : i64} {
  func.func @_bn_relu_kernel(%arg0: i32, %arg1: memref<128x128xf32, #tpu.memory_space<vmem>>, %arg2: memref<1x128xf32, #tpu.memory_space<vmem>>, %arg3: memref<1x128xf32, #tpu.memory_space<vmem>>, %arg4: memref<128x128xf32, #tpu.memory_space<vmem>>) attributes {dimension_semantics = [#tpu.dimension_semantics<parallel>], iteration_bounds = array<i64: 4>, scalar_prefetch = 0 : i64, scratch_operands = 0 : i64, tpu.core_type = #tpu.core_type<tc>, window_params = [{transform_indices = @transform_0, window_bounds = array<i64: 128, 128>}, {pipeline_mode = #tpu.pipeline_mode<synchronous>, transform_indices = @transform_1, window_bounds = array<i64: 1, 128>}, {pipeline_mode = #tpu.pipeline_mode<synchronous>, transform_indices = @transform_2, window_bounds = array<i64: 1, 128>}, {transform_indices = @transform_3, window_bounds = array<i64: 128, 128>}]} {
    %c0 = arith.constant 0 : index
    %c0_0 = arith.constant 0 : index
    %0 = vector.load %arg1[%c0, %c0_0] : memref<128x128xf32, #tpu.memory_space<vmem>>, vector<128x128xf32>
    %c0_1 = arith.constant 0 : index
    %c0_2 = arith.constant 0 : index
    %1 = vector.load %arg2[%c0_1, %c0_2] : memref<1x128xf32, #tpu.memory_space<vmem>>, vector<1x128xf32>
    %2 = vector.broadcast %1 : vector<1x128xf32> to vector<128x128xf32>
    %3 = arith.mulf %0, %2 : vector<128x128xf32>
    %c0_3 = arith.constant 0 : index
    %c0_4 = arith.constant 0 : index
    %4 = vector.load %arg3[%c0_3, %c0_4] : memref<1x128xf32, #tpu.memory_space<vmem>>, vector<1x128xf32>
    %5 = vector.broadcast %4 : vector<1x128xf32> to vector<128x128xf32>
    %6 = arith.addf %3, %5 : vector<128x128xf32>
    %cst = arith.constant 0.000000e+00 : f32
    %7 = vector.broadcast %cst : f32 to vector<128x128xf32>
    %8 = arith.maximumf %6, %7 : vector<128x128xf32>
    %c0_5 = arith.constant 0 : index
    %c0_6 = arith.constant 0 : index
    %9 = vector.load %arg4[%c0_5, %c0_6] : memref<128x128xf32, #tpu.memory_space<vmem>>, vector<128x128xf32>
    tpu.vector_store %arg4[%c0_5, %c0_6], %8 {strides = array<i32>} : memref<128x128xf32, #tpu.memory_space<vmem>>, vector<128x128xf32>,
    return
  }
  func.func @transform_0(%arg0: i32) -> (i32, i32) {
    %c0_i32 = arith.constant 0 : i32
    %c0_i32_0 = arith.constant 0 : i32
    return %arg0, %c0_i32 : i32, i32
  }
  func.func @transform_1(%arg0: i32) -> (i32, i32) {
    %c0_i32 = arith.constant 0 : i32
    %c0_i32_0 = arith.constant 0 : i32
    %c0_i32_1 = arith.constant 0 : i32
    return %c0_i32, %c0_i32_0 : i32, i32
  }
  func.func @transform_2(%arg0: i32) -> (i32, i32) {
    %c0_i32 = arith.constant 0 : i32
    %c0_i32_0 = arith.constant 0 : i32
    %c0_i32_1 = arith.constant 0 : i32
    return %c0_i32, %c0_i32_0 : i32, i32
  }
  func.func @transform_3(%arg0: i32) -> (i32, i32) {
    %c0_i32 = arith.constant 0 : i32
    %c0_i32_0 = arith.constant 0 : i32
    return %arg0, %c0_i32 : i32, i32
  }
}

</mosaic_0001>

<bundles_post_ra>
// kernel: unet3p_conv_block.3
= control target key start
LH: loop header
LB: loop body
LE: loop exit
PB: predicated region body
PF: predicated region fallthrough
CT: control target
= control target key end

     0   :  { %s373_s12 = smov 0   ;;  %s468_s0 = inlined_call_operand.vmem [shape: f32[512,128], index: 0, kind: input, shape index: {}]   ;;  %s469_s1 = inlined_call_operand.vmem [shape: f32[1,128], index: 1, kind: input, shape index: {}]   ;;  %s470_s2 = inlined_call_operand.vmem [shape: f32[1,128], index: 2, kind: input, shape index: {}]   ;;  %s471_s3 = inlined_call_operand.vmem [shape: f32[512,128], index: 3, kind: output, shape index: {}]  }
   0x1 LB: > { %s324_s13 = sadd.s32 4294967295, %s351_s12   ;;  %p328_p0 = scmp.ge.s32.totalorder %s351_s12, 1  ;;  %s351_s12 = sphi %s373_s12, %s13_s12  }
   0x2   : > { %p138_p1 = scmp.lt.s32.totalorder %s351_s12, 5 }
   0x4   : > { %p139_p2 = pnand %p328_p0, %p138_p1 }
   0x5   : > { %s329_s14 = sshll.u32 (!%p139_p2), %s324_s13, 4  ;;  %v384_v0 = vld [vmem:[%s469_s1] ss:$0 sm:$0xff] (!%p139_p2) }
   0x6   : > { %142 = sbr.rel (%p139_p2) target bundleno = 34 (0x22), region = 32  ;;  %p163_p3 = scmp.lt.s32.totalorder (!%p139_p2), %s329_s14, 63  ;;  %v394_v1 = vld [vmem:[%s470_s2] ss:$0 sm:$0xff] (!%p139_p2) }
   0xd   : > { %s473_s14 = smov (!%p163_p3, %s329_s14), 63 }
   0xe   : > { %s330_s15 = sshll.u32 %s473_s14, 3 }
   0xf   : > { %s389_s20 = scalar_lea.vmem %s468_s0, %s330_s15  ;;  %s417_s25 = scalar_lea.vmem %s471_s3, %s330_s15 }
  0x10   : > { %v174_v2 = vld [vmem:[%s389_s20] sm:$0xff]  ;;  %v175_v3 = vld [vmem:[%s389_s20 + $0x8] sm:$0xff]  ;;  %v176_v4 = vld [vmem:[%s389_s20 + $0x10] sm:$0xff] }
  0x11   : > { %v197_v5 = vmul.f32 %v384_v0, %v174_v2  ;;  %v198_v6 = vmul.f32 %v384_v0, %v175_v3  ;;  %v199_v7 = vmul.f32 %v384_v0, %v176_v4  ;;  %v177_v8 = vld [vmem:[%s389_s20 + $0x18] sm:$0xff]  ;;  %v178_v9 = vld [vmem:[%s389_s20 + $0x20] sm:$0xff]  ;;  %v179_v10 = vld [vmem:[%s389_s20 + $0x28] sm:$0xff] }
  0x12   : > { %v200_v11 = vmul.f32 %v384_v0, %v177_v8  ;;  %v201_v12 = vmul.f32 %v384_v0, %v178_v9  ;;  %v202_v13 = vmul.f32 %v384_v0, %v179_v10  ;;  %v180_v14 = vld [vmem:[%s389_s20 + $0x30] sm:$0xff]  ;;  %v181_v15 = vld [vmem:[%s389_s20 + $0x38] sm:$0xff]  ;;  %v182_v24 = vld [vmem:[%s389_s20 + $0x40] sm:$0xff] }
  0x13   : > { %v220_v16 = vadd.f32 %v394_v1, %v197_v5  ;;  %v221_v17 = vadd.f32 %v394_v1, %v198_v6  ;;  %v222_v18 = vadd.f32 %v394_v1, %v199_v7  ;;  %v203_v19 = vmul.f32 %v384_v0, %v180_v14  ;;  %v183_v25 = vld [vmem:[%s389_s20 + $0x48] sm:$0xff]  ;;  %v184_v26 = vld [vmem:[%s389_s20 + $0x50] sm:$0xff]  ;;  %v185_v31 = vld [vmem:[%s389_s20 + $0x58] sm:$0xff] }
  0x14   : > { %v223_v20 = vadd.f32 %v394_v1, %v200_v11  ;;  %v224_v21 = vadd.f32 %v394_v1, %v201_v12  ;;  %v225_v22 = vadd.f32 %v394_v1, %v202_v13  ;;  %v204_v23 = vmul.f32 %v384_v0, %v181_v15  ;;  %v186_v32 = vld [vmem:[%s389_s20 + $0x60] sm:$0xff]  ;;  %v187_v33 = vld [vmem:[%s389_s20 + $0x68] sm:$0xff]  ;;  %v188_v38 = vld [vmem:[%s389_s20 + $0x70] sm:$0xff] }
  0x15   : > { %v236_v27 = vmax.f32 %v220_v16, 0.0  ;;  %v237_v28 = vmax.f32 %v221_v17, 0.0  ;;  %v238_v29 = vmax.f32 %v222_v18, 0.0  ;;  %v226_v30 = vadd.f32 %v394_v1, %v203_v19  ;;  %v189_v43 = vld [vmem:[%s389_s20 + $0x78] sm:$0xff] }
  0x16   : > { %v239_v34 = vmax.f32 %v223_v20, 0.0  ;;  %v240_v35 = vmax.f32 %v224_v21, 0.0  ;;  %v241_v36 = vmax.f32 %v225_v22, 0.0  ;;  %v227_v37 = vadd.f32 %v394_v1, %v204_v23 }
  0x17   : > { %252 = vst [vmem:[%s417_s25] sm:$0xff] %v236_v27  ;;  %253 = vst [vmem:[%s417_s25 + $0x8] sm:$0xff] %v237_v28  ;;  %v242_v39 = vmax.f32 %v226_v30, 0.0  ;;  %v205_v40 = vmul.f32 %v384_v0, %v182_v24  ;;  %v206_v41 = vmul.f32 %v384_v0, %v183_v25  ;;  %v207_v42 = vmul.f32 %v384_v0, %v184_v26 }
  0x18   : > { %254 = vst [vmem:[%s417_s25 + $0x10] sm:$0xff] %v238_v29  ;;  %255 = vst [vmem:[%s417_s25 + $0x18] sm:$0xff] %v239_v34  ;;  %v243_v44 = vmax.f32 %v227_v37, 0.0  ;;  %v208_v45 = vmul.f32 %v384_v0, %v185_v31  ;;  %v209_v46 = vmul.f32 %v384_v0, %v186_v32  ;;  %v210_v47 = vmul.f32 %v384_v0, %v187_v33 }
  0x19   : > { %256 = vst [vmem:[%s417_s25 + $0x20] sm:$0xff] %v240_v35  ;;  %257 = vst [vmem:[%s417_s25 + $0x28] sm:$0xff] %v241_v36  ;;  %v228_v48 = vadd.f32 %v394_v1, %v205_v40  ;;  %v229_v49 = vadd.f32 %v394_v1, %v206_v41  ;;  %v230_v50 = vadd.f32 %v394_v1, %v207_v42 }
  0x1a   : > { %258 = vst [vmem:[%s417_s25 + $0x30] sm:$0xff] %v242_v39  ;;  %v211_v51 = vmul.f32 %v384_v0, %v188_v38  ;;  %259 = vst [vmem:[%s417_s25 + $0x38] sm:$0xff] %v243_v44  ;;  %v231_v52 = vadd.f32 %v394_v1, %v208_v45  ;;  %v232_v53 = vadd.f32 %v394_v1, %v209_v46 }
  0x1b   : > { %v233_v54 = vadd.f32 %v394_v1, %v210_v47  ;;  %v212_v55 = vmul.f32 %v384_v0, %v189_v43  ;;  %v244_v56 = vmax.f32 %v228_v48, 0.0  ;;  %v245_v57 = vmax.f32 %v229_v49, 0.0 }
  0x1c   : > { %v246_v58 = vmax.f32 %v230_v50, 0.0  ;;  %v234_v59 = vadd.f32 %v394_v1, %v211_v51  ;;  %v247_v60 = vmax.f32 %v231_v52, 0.0  ;;  %v248_v61 = vmax.f32 %v232_v53, 0.0 }
  0x1d   : > { %v249_v62 = vmax.f32 %v233_v54, 0.0  ;;  %v235_v63 = vadd.f32 %v394_v1, %v212_v55  ;;  %260 = vst [vmem:[%s417_s25 + $0x40] sm:$0xff] %v244_v56  ;;  %261 = vst [vmem:[%s417_s25 + $0x48] sm:$0xff] %v245_v57 }
  0x1e   : > { %262 = vst [vmem:[%s417_s25 + $0x50] sm:$0xff] %v246_v58  ;;  %v250_v2 = vmax.f32 %v234_v59, 0.0  ;;  %263 = vst [vmem:[%s417_s25 + $0x58] sm:$0xff] %v247_v60 }
  0x1f   : > { %264 = vst [vmem:[%s417_s25 + $0x60] sm:$0xff] %v248_v61  ;;  %265 = vst [vmem:[%s417_s25 + $0x68] sm:$0xff] %v249_v62  ;;  %v251_v0 = vmax.f32 %v235_v63, 0.0 }
  0x20   : > { %266 = vst [vmem:[%s417_s25 + $0x70] sm:$0xff] %v250_v2 }
  0x21   : > { %267 = vst [vmem:[%s417_s25 + $0x78] sm:$0xff] %v251_v0 }
  0x22 PF: > { %s13_s12 = sadd.s32 1, %s351_s12  }
  0x23   : > { %p10_p4 = scmp.ge.s32.totalorder %s13_s12, 6  }
  0x25   :  { %12 = sbr.rel (!%p10_p4) target bundleno = 1 (0x1), region = 62 }

// kernel: unet3p_conv_block.2
= control target key start
LH: loop header
LB: loop body
LE: loop exit
PB: predicated region body
PF: predicated region fallthrough
CT: control target
= control target key end

     0   :  { %s643_s12 = smov 0   ;;  %s720_s0 = inlined_call_operand.vmem [shape: bf16[512,36], index: 0, kind: input, shape index: {}]   ;;  %s721_s1 = inlined_call_operand.vmem [shape: bf16[36,128], index: 1, kind: input, shape index: {}]   ;;  %s722_s2 = inlined_call_operand.vmem [shape: f32[512,128], index: 2, kind: output, shape index: {0}]   ;;  %s723_s3 = inlined_call_operand.vmem [shape: f32[2,128], index: 3, kind: output, shape index: {1}]  }
   0x1 LB: > { %s522_s13 = sadd.s32 4294967295, %s620_s12   ;;  %p526_p0 = scmp.ge.s32.totalorder %s620_s12, 1  ;;  %s620_s12 = sphi %s643_s12, %s14_s12  }
   0x2   : > { %p136_p1 = scmp.lt.s32.totalorder %s620_s12, 5 }
   0x4   : > { %p137_p2 = pnand %p526_p0, %p136_p1 }
   0x5   : > { %s527_s14 = sshll.u32 (!%p137_p2), %s522_s13, 4  ;;  %p531_p4 = scmp.ne.s32.totalorder (!%p137_p2), %s522_s13, 0 }
   0x6   : > { %140 = sbr.rel (%p137_p2) target bundleno = 295 (0x127), region = 28  ;;  %p161_p3 = scmp.lt.s32.totalorder (!%p137_p2), %s527_s14, 63 }
   0xd   : > { %s725_s14 = smov (!%p161_p3, %s527_s14), 63  ;;  %176 = sbr.rel (%p531_p4) target bundleno = 20 (0x14), region = 32 }
   0xe   : > { %s528_s15 = sshll.u32 %s725_s14, 2  ;;  %s530_s16 = sshll.u32 %s725_s14, 3  ;;  %v622_v0 = vmov (!%p531_p4), 0.0  }
   0xf   : > { %s654_s19 = scalar_lea.vmem %s720_s0, %s528_s15  ;;  %s659_s22 = scalar_lea.vmem %s722_s2, %s530_s16  ;;  %177 = vst [vmem:[%s723_s3] sm:$0x3] (!%p531_p4), %v622_v0 }
  0x14 PF: > { %v603_v1 = vld [vmem:[%s721_s1] sm:$0xff]   ;;  %v604_v2 = vld [vmem:[%s721_s1 + $0x8] sm:$0xff]   ;;  %vm254_vm0 = vcmask 293888   ;;  %v605_v3 = vld [vmem:[%s721_s1 + $0x10] ss:$0 sps:$4 sm:$0x33]  }
  0x15   : > { %564 = vmatprep.subr.bf16.mxu0 %v603_v1  ;;  %v606_v4 = vld [vmem:[%s654_s19] sm:$0xff]   ;;  %586 = vmatprep.subr.bf16.mxu1 %v603_v1  ;;  %vm279_vm1 = vcmask 1041408   ;;  %v607_v7 = vld [vmem:[%s654_s19 + $0x8] sm:$0xff]   ;;  %v608_v9 = vld [vmem:[%s654_s19 + $0x10] sm:$0xff]  }
  0x16   : > { %565 = vmatpush3.bf16.msra.mxu0 %v603_v1  ;;  %589 = vmatpush3.bf16.msra.mxu1 %v603_v1  ;;  %v610_v5 = vld [vmem:[%s654_s19 + $0x20] sm:$0xff]   ;;  %v281_v6 = vsel %vm279_vm1, %v605_v3, 0  ;;  %v611_v8 = vld [vmem:[%s654_s19 + $0x28] sm:$0xff]   ;;  %v612_v10 = vld [vmem:[%s654_s19 + $0x30] sm:$0xff]  }
  0x17   : > { %566 = vmatprep.subr.bf16.mxu0 %v604_v2  ;;  %570 = vmatprep.mubr.msk.bf16.mxu0 %vm254_vm0, %v606_v4  ;;  %v609_v11 = vld [vmem:[%s654_s19 + $0x18] sm:$0xff]  }
  0x18   : > { %587 = vmatprep.subr.bf16.mxu1 %v604_v2  ;;  %578 = vmatprep.mubr.msk.bf16.mxu1 %vm254_vm0, %v610_v5  ;;  %v613_v12 = vld [vmem:[%s654_s19 + $0x38] sm:$0xff]  }
  0x1a   : > { %567 = vmatpush3.bf16.msra.mxu0 %v604_v2  ;;  %590 = vmatpush3.bf16.msra.mxu1 %v604_v2 }
  0x1b   : > { %592 = vmatprep.subr.msk.bf16.mxu0 %vm279_vm1, %v605_v3  ;;  %593 = vmatprep.subr.msk.bf16.mxu1 %vm279_vm1, %v605_v3 }
  0x1e   : > { %569 = vmatpush3.bf16.msra.mxu0 %v281_v6  ;;  %591 = vmatpush3.bf16.msra.mxu1 %v281_v6 }
  0x21   : > { %571 = vmatmul.mubr.msk.bf16.vlgmr.msra.gmra.mrb[0].mxu0 %vm254_vm0, %v607_v7  ;;  %579 = vmatmul.mubr.msk.bf16.vlgmr.msra.gmra.mrb[0].mxu1 %vm254_vm0, %v611_v8 }
  0x22   : > { %574 = vmatprep.mubr.msk.bf16.mxu0 %vm254_vm0, %v608_v9  ;;  %582 = vmatprep.mubr.msk.bf16.mxu1 %vm254_vm0, %v612_v10 }
  0x29   : > { %575 = vmatmul.mubr.msk.bf16.gmra.mrb[4].mxu0 %vm254_vm0, %v609_v11  ;;  %583 = vmatmul.mubr.msk.bf16.gmra.mrb[4].mxu1 %vm254_vm0, %v613_v12 }
  0xf4   : > { %v572_v13 = vpop.f32.mrb[0].mxu0  ;;  %v580_v14 = vpop.f32.mrb[0].mxu1 }
  0xf5   : > { %382 = vst [vmem:[%s659_s22 + $0x10] sm:$0xff] %v572_v13  ;;  %v317_v15 = vpop.f32.mrb[1].mxu0  ;;  %390 = vst [vmem:[%s659_s22 + $0x50] sm:$0xff] %v580_v14  ;;  %v349_v16 = vpop.f32.mrb[1].mxu1  ;;  %v423_v24 = vmul.f32 %v572_v13, %v572_v13  ;;  %v431_v56 = vmul.f32 %v580_v14, %v580_v14 }
  0xf6   : > { %380 = vst [vmem:[%s659_s22] sm:$0xff] %v317_v15  ;;  %v573_v17 = vpop.f32.mrb[2].mxu0  ;;  %388 = vst [vmem:[%s659_s22 + $0x40] sm:$0xff] %v349_v16  ;;  %v581_v18 = vpop.f32.mrb[2].mxu1  ;;  %v421_v21 = vmul.f32 %v317_v15, %v317_v15  ;;  %v429_v50 = vmul.f32 %v349_v16, %v349_v16 }
  0xf7   : > { %383 = vst [vmem:[%s659_s22 + $0x18] sm:$0xff] %v573_v17  ;;  %v320_v19 = vpop.f32.mrb[3].mxu0  ;;  %391 = vst [vmem:[%s659_s22 + $0x58] sm:$0xff] %v581_v18  ;;  %v352_v20 = vpop.f32.mrb[3].mxu1  ;;  %v424_v27 = vmul.f32 %v573_v17, %v573_v17  ;;  %v432_v59 = vmul.f32 %v581_v18, %v581_v18 }
  0xf8   : > { %381 = vst [vmem:[%s659_s22 + $0x8] sm:$0xff] %v320_v19  ;;  %v397_v22 = vadd.f32 %v320_v19, %v317_v15  ;;  %v422_v23 = vmul.f32 %v320_v19, %v320_v19  ;;  %389 = vst [vmem:[%s659_s22 + $0x48] sm:$0xff] %v352_v20  ;;  %v430_v55 = vmul.f32 %v352_v20, %v352_v20 }
  0xfa   : > { %v398_v25 = vadd.f32 %v572_v13, %v397_v22  ;;  %v437_v26 = vadd.f32 %v422_v23, %v421_v21  ;;  %v420_v23 = vld [vmem:[%s723_s3 + $0x1] sm:$0x1] }
  0xfc   : > { %v438_v28 = vadd.f32 %v437_v26, %v423_v24  ;;  %v576_v29 = vpop.f32.mrb[4].mxu0  ;;  %v399_v30 = vadd.f32 %v573_v17, %v398_v25  ;;  %v584_v31 = vpop.f32.mrb[4].mxu1 }
  0xfd   : > { %386 = vst [vmem:[%s659_s22 + $0x30] sm:$0xff] %v576_v29  ;;  %v333_v32 = vpop.f32.mrb[5].mxu0  ;;  %394 = vst [vmem:[%s659_s22 + $0x70] sm:$0xff] %v584_v31  ;;  %v365_v33 = vpop.f32.mrb[5].mxu1  ;;  %v427_v44 = vmul.f32 %v576_v29, %v576_v29  ;;  %v435_v4 = vmul.f32 %v584_v31, %v584_v31 }
  0xfe   : > { %384 = vst [vmem:[%s659_s22 + $0x20] sm:$0xff] %v333_v32  ;;  %v400_v34 = vadd.f32 %v399_v30, %v333_v32  ;;  %v425_v35 = vmul.f32 %v333_v32, %v333_v32  ;;  %v439_v36 = vadd.f32 %v438_v28, %v424_v27  ;;  %v577_v37 = vpop.f32.mrb[6].mxu0  ;;  %392 = vst [vmem:[%s659_s22 + $0x60] sm:$0xff] %v365_v33  ;;  %v585_v38 = vpop.f32.mrb[6].mxu1 }
  0xff   : > { %387 = vst [vmem:[%s659_s22 + $0x38] sm:$0xff] %v577_v37  ;;  %v336_v39 = vpop.f32.mrb[7].mxu0  ;;  %395 = vst [vmem:[%s659_s22 + $0x78] sm:$0xff] %v585_v38  ;;  %v368_v40 = vpop.f32.mrb[7].mxu1  ;;  %v428_v47 = vmul.f32 %v577_v37, %v577_v37  ;;  %v433_v62 = vmul.f32 %v365_v33, %v365_v33  ;;  %v436_v7 = vmul.f32 %v585_v38, %v585_v38 }
 0x100   : > { %v440_v41 = vadd.f32 %v439_v36, %v425_v35  ;;  %385 = vst [vmem:[%s659_s22 + $0x28] sm:$0xff] %v336_v39  ;;  %v401_v42 = vadd.f32 %v400_v34, %v336_v39  ;;  %v426_v43 = vmul.f32 %v336_v39, %v336_v39  ;;  %393 = vst [vmem:[%s659_s22 + $0x68] sm:$0xff] %v368_v40 }
 0x101   : > { %v434_v3 = vmul.f32 %v368_v40, %v368_v40 }
 0x102   : > { %v402_v45 = vadd.f32 %v576_v29, %v401_v42  ;;  %v441_v46 = vadd.f32 %v440_v41, %v426_v43 }
 0x104   : > { %v442_v48 = vadd.f32 %v441_v46, %v427_v44  ;;  %v403_v49 = vadd.f32 %v577_v37, %v402_v45 }
 0x106   : > { %v404_v51 = vadd.f32 %v403_v49, %v349_v16  ;;  %v443_v52 = vadd.f32 %v442_v48, %v428_v47 }
 0x108   : > { %v444_v53 = vadd.f32 %v443_v52, %v429_v50  ;;  %v405_v54 = vadd.f32 %v404_v51, %v352_v20  ;;  %v396_v20 = vld [vmem:[%s723_s3] sm:$0x1] }
 0x10a   : > { %v406_v57 = vadd.f32 %v580_v14, %v405_v54  ;;  %v445_v58 = vadd.f32 %v444_v53, %v430_v55 }
 0x10c   : > { %v446_v60 = vadd.f32 %v445_v58, %v431_v56  ;;  %v407_v61 = vadd.f32 %v581_v18, %v406_v57 }
 0x10e   : > { %v408_v63 = vadd.f32 %v407_v61, %v365_v33  ;;  %v447_v0 = vadd.f32 %v446_v60, %v432_v59 }
 0x110   : > { %v448_v1 = vadd.f32 %v447_v0, %v433_v62  ;;  %v409_v2 = vadd.f32 %v408_v63, %v368_v40 }
 0x112   : > { %v410_v5 = vadd.f32 %v584_v31, %v409_v2  ;;  %v449_v6 = vadd.f32 %v448_v1, %v434_v3 }
 0x114   : > { %v411_v8 = vadd.f32 %v585_v38, %v410_v5  ;;  %v450_v9 = vadd.f32 %v449_v6, %v435_v4 }
 0x116   : > { %v412_v10 = vrot.slane %v411_v8, 4  ;;  %v451_v11 = vadd.f32 %v450_v9, %v436_v7 }
 0x118   : > { %v413_v12 = vadd.f32 %v412_v10, %v411_v8  ;;  %v452_v13 = vrot.slane %v451_v11, 4 }
 0x11a   : > { %v414_v14 = vrot.slane %v413_v12, 2  ;;  %v453_v15 = vadd.f32 %v452_v13, %v451_v11 }
 0x11c   : > { %v415_v16 = vadd.f32 %v414_v14, %v413_v12  ;;  %v454_v17 = vrot.slane %v453_v15, 2 }
 0x11e   : > { %v416_v18 = vrot.slane %v415_v16, 1  ;;  %v455_v19 = vadd.f32 %v454_v17, %v453_v15 }
 0x120   : > { %v417_v21 = vadd.f32 %v416_v18, %v415_v16  ;;  %v456_v22 = vrot.slane %v455_v19, 1 }
 0x122   : > { %v418_v24 = vadd.f32 %v417_v21, %v396_v20  ;;  %v457_v25 = vadd.f32 %v456_v22, %v455_v19 }
 0x124   : > { %419 = vst [vmem:[%s723_s3] sm:$0x1] %v418_v24  ;;  %v458_v26 = vadd.f32 %v457_v25, %v420_v23 }
 0x126   : > { %459 = vst [vmem:[%s723_s3 + $0x1] sm:$0x1] %v458_v26 }
 0x127 PF: > { %s14_s12 = sadd.s32 1, %s620_s12  }
 0x128   : > { %p11_p5 = scmp.ge.s32.totalorder %s14_s12, 6  }
 0x12a   :  { %13 = sbr.rel (!%p11_p5) target bundleno = 1 (0x1), region = 70 }

</bundles_post_ra>
